<compile_context>
chip_gen: v5e
topology: v5e:2x2
jax: 0.10.0
libtpu: 0.0.40
codegen_flags: <defaults>
</compile_context>

<pallas_src>
import functools

import jax
import jax.numpy as jnp
from jax.experimental import pallas as pl
from jax.experimental.pallas import tpu as pltpu


def fpnet_kernel(x_ref, w1_ref, b1_ref, w2_ref, b2_ref,
                 wcls_ref, bcls_ref, out_ref, *, num_class):
    """One batch tile: shared trunk -> per-row NB scalar -> fused classifiers."""
    x = x_ref[...]

    # Shared trunk: FC1 -> relu -> FC2 -> relu.  In the reference, `fp` and
    # `fc` come from the *same* weights on the same input, so compute once.
    h = jnp.dot(x, w1_ref[...], preferred_element_type=jnp.float32) + b1_ref[...]
    h = jnp.maximum(h, 0.0)
    feat = jnp.dot(h, w2_ref[...], preferred_element_type=jnp.float32) + b2_ref[...]
    feat = jnp.maximum(feat, 0.0)
    # GradReverse is the identity in the forward pass: fc == fp == feat.

    # NB_algorithm(feat, feat) collapses to a per-row scalar:
    #   m   = ||feat||^2                (Matrix.magnitude = sum of squares)
    #   u   = feat / m,  w = <feat, u> = 1,  d = feat * (1 - 1/m)
    #   ud  = d / ||d||^2 = feat / (m - 1),  wd = <feat, ud> = m / (m - 1)
    #   fp_ = ud * wd = feat * m / (m - 1)^2
    m = jnp.sum(feat * feat, axis=-1, keepdims=True)          # (Bt, 1)
    t = m - 1.0
    s = m / (t * t)                                            # per-row scalar
    # NOTE: m == 1 (orthogonal component vanishes) or m == 0 (all-zero row
    # after relu) blows up exactly as the PyTorch reference does; no epsilon
    # is added on purpose.

    # TODO(synk): self.bn(fp_) only updates BatchNorm1d running statistics and
    # its output is discarded, so it has no forward-value effect; skipped.

    # Fused classifiers: one K=128 MXU matmul against [Wc | Wp | 0-pad]; the
    # per-row scale is applied only to the Wp lanes (scale commutes with the
    # contraction), then one lane-dense (Bt, 128) store.
    logits = jnp.dot(feat, wcls_ref[...], preferred_element_type=jnp.float32)
    lane = jax.lax.broadcasted_iota(jnp.int32, logits.shape, dimension=1)
    is_fp_lane = (lane >= num_class) & (lane < 2 * num_class)
    out_ref[...] = logits * jnp.where(is_fp_lane, s, 1.0) + bcls_ref[...]


def prepare_params(W1, b1, W2, b2, Wc, bc, Wp, bp):
    """One-time parameter packing, hoisted out of the per-call path.

    Transposes weights to (in, out) and merges the two classifiers into a
    single lane-padded (F, 128) block [Wc | Wp | 0]."""
    num_class, F = Wc.shape                  # Wc: (num_class, out_channels)
    P = max(128, ((2 * num_class + 127) // 128) * 128)
    wcls = jnp.zeros((F, P), jnp.float32)
    wcls = wcls.at[:, :num_class].set(Wc.T)
    wcls = wcls.at[:, num_class:2 * num_class].set(Wp.T)
    bcls = jnp.zeros((1, P), jnp.float32)
    bcls = bcls.at[:, :num_class].set(bc[None, :])
    bcls = bcls.at[:, num_class:2 * num_class].set(bp[None, :])
    return dict(w1=W1.T, b1=b1[None, :], w2=W2.T, b2=b2[None, :],
                wcls=wcls, bcls=bcls, num_class=int(num_class))


def fpnet_forward(x, params, *, block_b=256):
    """x: (B, in_channels) f32.  Returns (out_c, out_p), each (B, num_class)."""
    w1, b1, w2, b2 = params["w1"], params["b1"], params["w2"], params["b2"]
    wcls, bcls = params["wcls"], params["bcls"]
    nc = params["num_class"]
    B, Cin = x.shape
    F = w2.shape[1]
    P = wcls.shape[1]
    kernel = functools.partial(fpnet_kernel, num_class=nc)

    if B <= block_b:
        # Tiny batch: single ungridded call, everything VMEM-resident
        # (total footprint ~160 KiB — far under VMEM on every generation).
        out = pl.pallas_call(
            kernel,
            out_shape=jax.ShapeDtypeStruct((B, P), jnp.float32),
            in_specs=[pl.BlockSpec(memory_space=pltpu.MemorySpace.VMEM)] * 7,
            out_specs=pl.BlockSpec(memory_space=pltpu.MemorySpace.VMEM),
        )(x, w1, b1, w2, b2, wcls, bcls)
    else:
        # Large batch: grid over batch tiles.  Weight index_maps are constant
        # so weights stay VMEM-resident and are not re-DMA'd per step; the
        # batch axis is "parallel" so the two v7x TensorCores split it
        # (no-op on v5e/v6e).
        Bp = ((B + block_b - 1) // block_b) * block_b
        if Bp != B:
            x = jnp.pad(x, ((0, Bp - B), (0, 0)))
        out = pl.pallas_call(
            kernel,
            out_shape=jax.ShapeDtypeStruct((Bp, P), jnp.float32),
            grid=(Bp // block_b,),
            in_specs=[
                pl.BlockSpec((block_b, Cin), lambda i: (i, 0)),
                pl.BlockSpec((Cin, Cin), lambda i: (0, 0)),
                pl.BlockSpec((1, Cin), lambda i: (0, 0)),
                pl.BlockSpec((Cin, F), lambda i: (0, 0)),
                pl.BlockSpec((1, F), lambda i: (0, 0)),
                pl.BlockSpec((F, P), lambda i: (0, 0)),
                pl.BlockSpec((1, P), lambda i: (0, 0)),
            ],
            out_specs=pl.BlockSpec((block_b, P), lambda i: (i, 0)),
            compiler_params=pltpu.CompilerParams(
                dimension_semantics=("parallel",)),
        )(x, w1, b1, w2, b2, wcls, bcls)
        out = out[:B]

    return out[:, :nc], out[:, nc:2 * nc]


def _reference(x, W1, b1, W2, b2, Wc, bc, Wp, bp):
    """Pure-JAX faithful translation of the PyTorch forward (original op order)."""
    h = jnp.maximum(x @ W1.T + b1, 0.0)
    feat = jnp.maximum(h @ W2.T + b2, 0.0)
    fp = feat
    fc = feat                                   # GradReverse: identity forward
    out_c = fc @ Wc.T + bc
    mag_fc = jnp.sum(fc * fc, axis=-1, keepdims=True)
    u = fc / mag_fc
    w = jnp.sum(fp * u, axis=-1, keepdims=True)
    d = fp - u * w
    mag_d = jnp.sum(d * d, axis=-1, keepdims=True)
    ud = d / mag_d
    wd = jnp.sum(fp * ud, axis=-1, keepdims=True)
    fp_ = ud * wd
    out_p = fp_ @ Wp.T + bp
    return out_c, out_p


if __name__ == "__main__":
    key = jax.random.PRNGKey(0)
    in_channels, out_channels, num_class = 32, 128, 10
    ks = jax.random.split(key, 6)

    def linear_init(k, fan_in, fan_out):
        # PyTorch nn.Linear default init: U(-1/sqrt(fan_in), 1/sqrt(fan_in)).
        kw, kb = jax.random.split(k)
        bound = 1.0 / (fan_in ** 0.5)
        W = jax.random.uniform(kw, (fan_out, fan_in), jnp.float32, -bound, bound)
        b = jax.random.uniform(kb, (fan_out,), jnp.float32, -bound, bound)
        return W, b

    # FP1/FP2 exist in __init__ but are unused in forward — not materialized.
    W1, b1 = linear_init(ks[0], in_channels, in_channels)      # FC1
    W2, b2 = linear_init(ks[1], in_channels, out_channels)     # FC2
    Wc, bc = linear_init(ks[2], out_channels, num_class)       # classifier_fc
    Wp, bp = linear_init(ks[3], out_channels, num_class)       # classifier_fp

    # One-time packing (NOT repeated per forward call).
    params = prepare_params(W1, b1, W2, b2, Wc, bc, Wp, bp)

    def check(name, got, want, rtol, atol=1e-4):
        err = jnp.max(jnp.abs(got - want))
        assert jnp.allclose(got, want, rtol=rtol, atol=atol), \
            f"{name} mismatch, max err {err}"

    # out_p tolerance is slightly looser: the per-row scalar s = m/(m-1)^2
    # amplifies tiny trunk rounding differences for rows with ||feat||^2 near 1.

    # 1) Tiny batch: single ungridded, fully VMEM-resident call.
    x_small = jax.random.normal(ks[4], (8, in_channels), jnp.float32)
    out_c, out_p = fpnet_forward(x_small, params)
    jax.block_until_ready((out_c, out_p))
    ref_c, ref_p = _reference(x_small, W1, b1, W2, b2, Wc, bc, Wp, bp)
    check("out_c(small)", out_c, ref_c, rtol=1e-4)
    check("out_p(small)", out_p, ref_p, rtol=1e-3)

    # 2) Larger batch: gridded over 128-row tiles (batch axis "parallel").
    x_large = jax.random.normal(ks[5], (200, in_channels), jnp.float32)
    out_c2, out_p2 = fpnet_forward(x_large, params, block_b=128)
    jax.block_until_ready((out_c2, out_p2))
    ref_c2, ref_p2 = _reference(x_large, W1, b1, W2, b2, Wc, bc, Wp, bp)
    check("out_c(large)", out_c2, ref_c2, rtol=1e-4)
    check("out_p(large)", out_p2, ref_p2, rtol=1e-3)

    print("KERNEL_OK")
</pallas_src>

<mosaic_0001>
module attributes {stable_mosaic.version = 11 : i64} {
  func.func @fpnet_kernel(%arg0: memref<8x32xf32, #tpu.memory_space<vmem>>, %arg1: memref<32x32xf32, #tpu.memory_space<vmem>>, %arg2: memref<1x32xf32, #tpu.memory_space<vmem>>, %arg3: memref<32x128xf32, #tpu.memory_space<vmem>>, %arg4: memref<1x128xf32, #tpu.memory_space<vmem>>, %arg5: memref<128x128xf32, #tpu.memory_space<vmem>>, %arg6: memref<1x128xf32, #tpu.memory_space<vmem>>, %arg7: memref<8x128xf32, #tpu.memory_space<vmem>>) attributes {dimension_semantics = [], scalar_prefetch = 0 : i64, scratch_operands = 0 : i64, tpu.core_type = #tpu.core_type<tc>} {
    %c0 = arith.constant 0 : index
    %c0_0 = arith.constant 0 : index
    %0 = vector.load %arg0[%c0, %c0_0] : memref<8x32xf32, #tpu.memory_space<vmem>>, vector<8x32xf32>
    %c0_1 = arith.constant 0 : index
    %c0_2 = arith.constant 0 : index
    %1 = vector.load %arg1[%c0_1, %c0_2] : memref<32x32xf32, #tpu.memory_space<vmem>>, vector<32x32xf32>
    %cst = arith.constant dense<0.000000e+00> : vector<8x32xf32>
    %2 = tpu.matmul %0, %1, %cst {dimension_numbers = #tpu.dot_dimension_numbers<[1], [0], [0], [1], [0, 0, 1, 1], [], []>} : vector<8x32xf32>, vector<32x32xf32>, vector<8x32xf32> -> vector<8x32xf32>
    %c0_3 = arith.constant 0 : index
    %c0_4 = arith.constant 0 : index
    %3 = vector.load %arg2[%c0_3, %c0_4] : memref<1x32xf32, #tpu.memory_space<vmem>>, vector<1x32xf32>
    %4 = vector.broadcast %3 : vector<1x32xf32> to vector<8x32xf32>
    %5 = arith.addf %2, %4 : vector<8x32xf32>
    %cst_5 = arith.constant 0.000000e+00 : f32
    %6 = vector.broadcast %cst_5 : f32 to vector<8x32xf32>
    %7 = arith.maximumf %5, %6 : vector<8x32xf32>
    %c0_6 = arith.constant 0 : index
    %c0_7 = arith.constant 0 : index
    %8 = vector.load %arg3[%c0_6, %c0_7] : memref<32x128xf32, #tpu.memory_space<vmem>>, vector<32x128xf32>
    %cst_8 = arith.constant dense<0.000000e+00> : vector<8x128xf32>
    %9 = tpu.matmul %7, %8, %cst_8 {dimension_numbers = #tpu.dot_dimension_numbers<[1], [0], [0], [1], [0, 0, 1, 1], [], []>} : vector<8x32xf32>, vector<32x128xf32>, vector<8x128xf32> -> vector<8x128xf32>
    %c0_9 = arith.constant 0 : index
    %c0_10 = arith.constant 0 : index
    %10 = vector.load %arg4[%c0_9, %c0_10] : memref<1x128xf32, #tpu.memory_space<vmem>>, vector<1x128xf32>
    %11 = vector.broadcast %10 : vector<1x128xf32> to vector<8x128xf32>
    %12 = arith.addf %9, %11 : vector<8x128xf32>
    %cst_11 = arith.constant 0.000000e+00 : f32
    %13 = vector.broadcast %cst_11 : f32 to vector<8x128xf32>
    %14 = arith.maximumf %12, %13 : vector<8x128xf32>
    %15 = arith.mulf %14, %14 : vector<8x128xf32>
    %cst_12 = arith.constant dense<0.000000e+00> : vector<8xf32>
    %16 = vector.multi_reduction <add>, %15, %cst_12 [1] : vector<8x128xf32> to vector<8xf32>
    %17 = vector.shape_cast %16 : vector<8xf32> to vector<8x1xf32>
    %cst_13 = arith.constant 1.000000e+00 : f32
    %18 = vector.broadcast %cst_13 : f32 to vector<8x1xf32>
    %19 = arith.subf %17, %18 : vector<8x1xf32>
    %20 = arith.mulf %19, %19 : vector<8x1xf32>
    %21 = arith.divf %17, %20 : vector<8x1xf32>
    %c0_14 = arith.constant 0 : index
    %c0_15 = arith.constant 0 : index
    %22 = vector.load %arg5[%c0_14, %c0_15] : memref<128x128xf32, #tpu.memory_space<vmem>>, vector<128x128xf32>
    %cst_16 = arith.constant dense<0.000000e+00> : vector<8x128xf32>
    %23 = tpu.matmul %14, %22, %cst_16 {dimension_numbers = #tpu.dot_dimension_numbers<[1], [0], [0], [1], [0, 0, 1, 1], [], []>} : vector<8x128xf32>, vector<128x128xf32>, vector<8x128xf32> -> vector<8x128xf32>
    %24 = tpu.iota {dimensions = array<i32: 1>} : vector<8x128xi32>
    %c10_i32 = arith.constant 10 : i32
    %25 = vector.broadcast %c10_i32 : i32 to vector<8x128xi32>
    %26 = arith.cmpi sge, %24, %25 : vector<8x128xi32>
    %c20_i32 = arith.constant 20 : i32
    %27 = vector.broadcast %c20_i32 : i32 to vector<8x128xi32>
    %28 = arith.cmpi slt, %24, %27 : vector<8x128xi32>
    %29 = arith.andi %26, %28 : vector<8x128xi1>
    %cst_17 = arith.constant 1.000000e+00 : f32
    %30 = vector.shape_cast %21 : vector<8x1xf32> to vector<8x1xf32>
    %31 = vector.broadcast %30 : vector<8x1xf32> to vector<8x128xf32>
    %32 = vector.broadcast %cst_17 : f32 to vector<8x128xf32>
    %33 = arith.select %29, %31, %32 : vector<8x128xi1>, vector<8x128xf32>
    %34 = arith.mulf %23, %33 : vector<8x128xf32>
    %c0_18 = arith.constant 0 : index
    %c0_19 = arith.constant 0 : index
    %35 = vector.load %arg6[%c0_18, %c0_19] : memref<1x128xf32, #tpu.memory_space<vmem>>, vector<1x128xf32>
    %36 = vector.broadcast %35 : vector<1x128xf32> to vector<8x128xf32>
    %37 = arith.addf %34, %36 : vector<8x128xf32>
    %c0_20 = arith.constant 0 : index
    %c0_21 = arith.constant 0 : index
    %38 = vector.load %arg7[%c0_20, %c0_21] : memref<8x128xf32, #tpu.memory_space<vmem>>, vector<8x128xf32>
    tpu.vector_store %arg7[%c0_20, %c0_21], %37 {strides = array<i32>} : memref<8x128xf32, #tpu.memory_space<vmem>>, vector<8x128xf32>,
    return
  }
}

</mosaic_0001>

<bundles_post_ra>
// kernel: tpu_custom_call.1
= control target key start
LH: loop header
LB: loop body
LE: loop exit
PB: predicated region body
PF: predicated region fallthrough
CT: control target
= control target key end

     0   :  { %12 = vsyncpa [#allocation3], 0  ;;  %s458_s0 = inlined_call_operand.hbm [shape: f32[8,32], index: 0, kind: input, shape index: {}]   ;;  %s459_s1 = inlined_call_operand.hbm [shape: f32[32,32], index: 1, kind: input, shape index: {}]   ;;  %s460_s2 = inlined_call_operand.vmem [shape: f32[1,32], index: 2, kind: input, shape index: {}]   ;;  %s461_s3 = inlined_call_operand.hbm [shape: f32[32,128], index: 3, kind: input, shape index: {}]   ;;  %s462_s4 = inlined_call_operand.vmem [shape: f32[1,128], index: 4, kind: input, shape index: {}]   ;;  %s463_s5 = inlined_call_operand.hbm [shape: f32[128,128], index: 5, kind: input, shape index: {}]   ;;  %s464_s6 = inlined_call_operand.vmem [shape: f32[1,128], index: 6, kind: input, shape index: {}]   ;;  %s465_s7 = inlined_call_operand.hbm [shape: f32[8,128], index: 7, kind: output, shape index: {}]  }
   0x1   :  { %13 = vsyncpa [#allocation6], 0 }
   0x2   :  { %14 = vsyncpa [#allocation9], 0  ;;  %s31_s26 = sshll.u32 %s459_s1, 4  ;;  %s32_s26 = int_to_ptr.hbm [resolvable:$true] %s31_s26 }
   0x3   :  { %15 = vsyncpa [#allocation4], 0  ;;  %s385_s27 = smov [#allocation5]   ;;  %s21_s8 = sshll.u32 %s458_s0, 4  ;;  %s22_s8 = int_to_ptr.hbm [resolvable:$true] %s21_s8 }
   0x4   :  { %s33_s28 = sshll.u32 %s385_s27, 4  ;;  %s386_s9 = smov 128   ;;  %s34_s28 = int_to_ptr.vmem [resolvable:$true] %s33_s28 }
   0x5   :  { %s387_s10 = smov 8   ;;  %s388_s11 = smov [#allocation2]  }
   0x6   :  { %39 = dma.hbm_to_vmem [thread:$0]  %s32_s26, 512, %s34_s28, [#allocation6], %s386_s9, %s386_s9, %s387_s10  }
   0x7   :  { %s23_s12 = sshll.u32 %s388_s11, 4  ;;  %s46_s15 = sshll.u32 %s461_s3, 4  ;;  %s24_s12 = int_to_ptr.vmem [resolvable:$true] %s23_s12  ;;  %s47_s15 = int_to_ptr.hbm [resolvable:$true] %s46_s15 }
   0x8   :  { %26 = dma.hbm_to_vmem [thread:$0]  %s22_s8, 128, %s24_s12, [#allocation3]  }
   0x9   :  { %s61_s17 = sshll.u32 %s463_s5, 4  ;;  %s389_s18 = smov [#allocation7]   ;;  %s62_s17 = int_to_ptr.hbm [resolvable:$true] %s61_s17 }
   0xa   :  { %s48_s19 = sshll.u32 %s389_s18, 4  ;;  %s390_s0 = smov [#allocation8]   ;;  %s49_s19 = int_to_ptr.vmem [resolvable:$true] %s48_s19 }
   0xb   :  { %54 = dma.hbm_to_vmem [thread:$0]  %s47_s15, 512, %s49_s19, [#allocation6], %s386_s9, %s386_s9, %s387_s10  }
   0xc   :  { %s63_s20 = sshll.u32 %s390_s0, 4  ;;  %s64_s20 = int_to_ptr.vmem [resolvable:$true] %s63_s20 }
   0xd   :  { %69 = dma.hbm_to_vmem [thread:$0]  %s62_s17, 2048, %s64_s20, [#allocation9], %s386_s9, %s386_s9, %s387_s10  }
   0xe   :  { %377 = dma.done.wait [#allocation3], 128  }
   0xf   :  { %378 = vsyncadd [#allocation3], 4294967168 }
  0x10   :  { %379 = dma.done.wait [#allocation6], 1024  }
  0x11   :  { %380 = vsyncadd [#allocation6], 4294966272 }
  0x12   :  { %381 = dma.done.wait [#allocation9], 2048  }
  0x13   :  { %382 = vsyncadd [#allocation9], 4294965248  ;;  %v92_v0 = vld [vmem:[#allocation5 + $0x18] sm:$0xff]  ;;  %v91_v1 = vld [vmem:[#allocation5 + $0x10] sm:$0xff]  ;;  %vm97_vm0 = vcmask 261120   ;;  %v210_v37 = vlaneseq  ;;  %s391_s23 = smov [#allocation10]  }
  0x14   :  { %113 = vmatpush.msra.mxu0 %v92_v0  ;;  %v125_v2 = vld [vmem:[#allocation7 + $0x18] sm:$0xff]  ;;  %v90_v3 = vld [vmem:[#allocation5 + $0x8] sm:$0xff]  ;;  %v89_v4 = vld [vmem:[#allocation5] sm:$0xff]  ;;  %s228_s24 = sshll.u32 %s391_s23, 4  ;;  %s230_s27 = sshll.u32 %s465_s7, 4  ;;  %s229_s24 = int_to_ptr.vmem [resolvable:$true] %s228_s24  ;;  %s231_s27 = int_to_ptr.hbm [resolvable:$true] %s230_s27 }
  0x15   :  { %145 = vmatpush.msra.mxu1 %v125_v2  ;;  %v88_v5 = vld [vmem:[#allocation2] sm:$0xff]  ;;  %v124_v6 = vld [vmem:[#allocation7 + $0x10] sm:$0xff]  ;;  %v123_v7 = vld [vmem:[#allocation7 + $0x8] sm:$0xff]  ;;  %v211_v41 = vand.u32 127, %v210_v37 }
  0x16   :  { %114 = vmatpush.msra.mxu0 %v91_v1  ;;  %v122_v8 = vld [vmem:[#allocation7] sm:$0xff]  ;;  %v189_v9 = vld [vmem:[#allocation8 + $0x78] sm:$0xff]  ;;  %v188_v10 = vld [vmem:[#allocation8 + $0x70] sm:$0xff] }
  0x17   :  { %146 = vmatpush.msra.mxu1 %v124_v6  ;;  %190 = vmatpush.msra.mxu2 %v189_v9  ;;  %v187_v11 = vld [vmem:[#allocation8 + $0x68] sm:$0xff]  ;;  %v186_v12 = vld [vmem:[#allocation8 + $0x60] sm:$0xff]  ;;  %v185_v13 = vld [vmem:[#allocation8 + $0x58] sm:$0xff]  ;;  %vm212_vm3 = vcmp.ge.s32.totalorder %v211_v41, 10  ;;  %vm213_vm4 = vcmp.lt.s32.totalorder %v211_v41, 20 }
  0x18   :  { %115 = vmatpush.msra.mxu0 %v90_v3  ;;  %v184_v14 = vld [vmem:[#allocation8 + $0x50] sm:$0xff]  ;;  %v183_v15 = vld [vmem:[#allocation8 + $0x48] sm:$0xff]  ;;  %v182_v16 = vld [vmem:[#allocation8 + $0x40] sm:$0xff] }
  0x19   :  { %147 = vmatpush.msra.mxu1 %v123_v7  ;;  %191 = vmatpush.msra.mxu2 %v188_v10  ;;  %v181_v17 = vld [vmem:[#allocation8 + $0x38] sm:$0xff]  ;;  %v180_v18 = vld [vmem:[#allocation8 + $0x30] sm:$0xff]  ;;  %v179_v19 = vld [vmem:[#allocation8 + $0x28] sm:$0xff] }
  0x1a   :  { %116 = vmatpush.msra.mxu0 %v89_v4  ;;  %v178_v20 = vld [vmem:[#allocation8 + $0x20] sm:$0xff]  ;;  %v177_v21 = vld [vmem:[#allocation8 + $0x18] sm:$0xff]  ;;  %v176_v26 = vld [vmem:[#allocation8 + $0x10] sm:$0xff] }
  0x1b   :  { %242 = vmatmul.msk.f32.vlgmr.msra.gmra.mxu0 %vm97_vm0, %v88_v5  ;;  %148 = vmatpush.msra.mxu1 %v122_v8  ;;  %v252_v22 = vld [vmem:[%s460_s2] ss:$0 sm:$0xff]  ;;  %v175_v27 = vld [vmem:[#allocation8 + $0x8] sm:$0xff]  ;;  %v174_v28 = vld [vmem:[#allocation8] sm:$0xff] }
  0x1c   :  { %192 = vmatpush.msra.mxu2 %v187_v11  ;;  %v253_v29 = vld [vmem:[%s462_s4] ss:$0 sm:$0xff]  ;;  %vm214_vm7 = vmand %vm212_vm3, %vm213_vm4 }
  0x1d   :  { %v254_v50 = vld [vmem:[%s464_s6] ss:$0 sm:$0xff] }
  0x1e   :  { %193 = vmatpush.msra.mxu2 %v186_v12 }
  0x20   :  { %194 = vmatpush.msra.mxu2 %v185_v13 }
  0x22   :  { %195 = vmatpush.msra.mxu2 %v184_v14 }
  0x24   :  { %196 = vmatpush.msra.mxu2 %v183_v15 }
  0x26   :  { %197 = vmatpush.msra.mxu2 %v182_v16 }
  0x28   :  { %198 = vmatpush.msra.mxu2 %v181_v17 }
  0x2a   :  { %199 = vmatpush.msra.mxu2 %v180_v18 }
  0x2c   :  { %200 = vmatpush.msra.mxu2 %v179_v19 }
  0x2e   :  { %201 = vmatpush.msra.mxu2 %v178_v20 }
  0x30   :  { %202 = vmatpush.msra.mxu2 %v177_v21 }
  0x32   :  { %203 = vmatpush.msra.mxu2 %v176_v26 }
  0x34   :  { %204 = vmatpush.msra.mxu2 %v175_v27 }
  0x36   :  { %205 = vmatpush.msra.mxu2 %v174_v28 }
  0x98   :  { %v118_v23 = vpop.f32.mrf.mxu0 }
  0x99   :  { %v119_v24 = vadd.f32 %v252_v22, %v118_v23 }
  0x9b   :  { %v121_v25 = vmax.f32 %v119_v24, 0.0 }
  0x9d   :  { %243 = vmatmul.msk.f32.vlgmr.msra.gmra.mxu1 %vm97_vm0, %v121_v25 }
 0x11a   :  { %v150_v30 = vpop.f32.mrf.mxu1 }
 0x11b   :  { %v151_v31 = vadd.f32 %v253_v29, %v150_v30 }
 0x11d   :  { %v153_v32 = vmax.f32 %v151_v31, 0.0 }
 0x11f   :  { %206 = vmatmul.f32.vlgmr.msra.gmra.mxu2 %v153_v32  ;;  %v154_v33 = vmul.f32 %v153_v32, %v153_v32 }
 0x121   :  { %155 = vadd.xlane.f32.xlu0 %v154_v33 }
 0x194   :  { %v156_v34 = vpop.xlane.xlu0 %155 }
 0x195   :  { %v244_v35 = vadd.f32 -1.0, %v156_v34 }
 0x197   :  { %v158_v36 = vmul.f32 %v244_v35, %v244_v35 }
 0x199   :  { %255 = vrcp.f32 %v158_v36  ;;  %v170_v42 = vand.u32 2147483648, %v158_v36  ;;  %v168_v44 = vand.u32 2147483647, %v158_v36  ;;  %vm164_vm2 = vweird.f32 %v158_v36 }
 0x19b   :  { %v171_v46 = vor.u32 1.1754944e-38, %v170_v42  ;;  %vm169_vm6 = vcmp.eq.f32.partialorder %v168_v44, 8.507059e+37 }
 0x19f   :  { %v256_v38 = vpop.eup %255 }
 0x1a0   :  { %v160_v39 = vmul.f32 %v256_v38, %v158_v36  ;;  %vm165_vm1 = vweird.f32 %v256_v38 }
 0x1a1   :  { %vm166_vm5 = vmor %vm164_vm2, %vm165_vm1 }
 0x1a2   :  { %v161_v40 = vsub.f32 1.0, %v160_v39  ;;  %v207_v51 = vpop.f32.mrf.mxu2 }
 0x1a4   :  { %v162_v43 = vmul.f32 %v256_v38, %v161_v40 }
 0x1a6   :  { %v163_v45 = vadd.f32 %v256_v38, %v162_v43 }
 0x1a8   :  { %v167_v47 = vsel %vm166_vm5, %v256_v38, %v163_v45 }
 0x1a9   :  { %v172_v48 = vsel %vm169_vm6, %v171_v46, %v167_v47 }
 0x1aa   :  { %v173_v49 = vmul.f32 %v172_v48, %v156_v34 }
 0x1ac   :  { %v215_v52 = vsel %vm214_vm7, %v173_v49, 1.0 }
 0x1ad   :  { %v216_v53 = vmul.f32 %v215_v52, %v207_v51 }
 0x1af   :  { %v221_v54 = vadd.f32 %v254_v50, %v216_v53 }
 0x1b1   :  { %222 = vst [vmem:[#allocation10] sm:$0xff] %v221_v54 }
 0x1b2   :  { %233 = dma.vmem_to_hbm [thread:$0]  %s229_s24, 128, %s231_s27, [#allocation4]  }
 0x1b3   :  { %383 = dma.done.wait [#allocation4], 128  }
 0x1b4   :  { %384 = vsyncadd [#allocation4], 4294967168 }
 0x1b5   :  { %238 = vsyncpa [#allocation3], 1 }
 0x1b6   :  { %239 = vsyncpa [#allocation6], 1 }
 0x1b7   :  { %240 = vsyncpa [#allocation9], 1 }
 0x1b8   :  { %241 = vsyncpa [#allocation4], 1 }

</bundles_post_ra>
